<compile_context>
chip_gen: v5e
topology: v5e:2x2
jax: 0.10.0
libtpu: 0.0.40
codegen_flags: <defaults>
</compile_context>

<pallas_src>
import jax
import jax.numpy as jnp
import numpy as np
from jax import lax
from jax.experimental import pallas as pl
from jax.experimental.pallas import tpu as pltpu


def _round_up(n, m):
    return ((n + m - 1) // m) * m


def _largest_tile(n, target):
    """Largest divisor of n that is <= target and a multiple of 8 (or n itself)."""
    for d in range(min(n, target), 0, -1):
        if n % d == 0 and (d % 8 == 0 or d == n):
            return d
    return n


# --------------------- projection kernel: 1x1 convs as matmuls ---------------

def _pam_proj_kernel(x_ref, wb_ref, bb_ref, wc_ref, bc_ref, wd_ref, bd_ref,
                     fb_ref, fc_ref, fd_ref):
    # x_ref: (tp, Cp) pixel-major slab; weights already (C_in, C_out) layout.
    x = x_ref[...].astype(wb_ref.dtype)
    fb = jnp.dot(x, wb_ref[...], preferred_element_type=jnp.float32) + bb_ref[...]
    fc = jnp.dot(x, wc_ref[...], preferred_element_type=jnp.float32) + bc_ref[...]
    fd = jnp.dot(x, wd_ref[...], preferred_element_type=jnp.float32) + bd_ref[...]
    fb_ref[...] = fb.astype(fb_ref.dtype)
    fc_ref[...] = fc.astype(fc_ref.dtype)
    fd_ref[...] = fd.astype(fd_ref.dtype)


# ------------- flash-style attention + alpha-scaled residual kernel ----------

def _pam_attn_kernel(fb_ref, fc_ref, fd_ref, x_ref, alpha_ref, out_ref,
                     m_sc, l_sc, acc_sc):
    ki = pl.program_id(2)

    @pl.when(ki == 0)
    def _():
        m_sc[...] = jnp.full_like(m_sc, -jnp.inf)
        l_sc[...] = jnp.zeros_like(l_sc)
        acc_sc[...] = jnp.zeros_like(acc_sc)

    # energy tile (tq, tk): contract last dims of fb (tq,Crp) and fc (tk,Crp)
    # directly on the MXU -- no explicit transpose.
    s = lax.dot_general(fb_ref[...], fc_ref[...],
                        dimension_numbers=(((1,), (1,)), ((), ())),
                        preferred_element_type=jnp.float32)

    m_prev = m_sc[...]
    m_new = jnp.maximum(m_prev, jnp.max(s, axis=-1, keepdims=True))
    corr = jnp.exp(m_prev - m_new)
    p = jnp.exp(s - m_new)
    l_sc[...] = corr * l_sc[...] + jnp.sum(p, axis=-1, keepdims=True)
    acc_sc[...] = corr * acc_sc[...] + jnp.dot(
        p.astype(fd_ref.dtype), fd_ref[...], preferred_element_type=jnp.float32)
    m_sc[...] = m_new

    @pl.when(ki == pl.num_programs(2) - 1)
    def _():
        inv_l = pl.reciprocal(l_sc[...], approx=True)      # EUP, frees VALU
        alpha = alpha_ref[0, 0]                            # scalar from SMEM
        out_ref[...] = (alpha * (acc_sc[...] * inv_l)
                        + x_ref[...].astype(jnp.float32)).astype(out_ref.dtype)


# -------------------------------- wrapper ------------------------------------

def position_attention(x_nchw, wb, bb, wc, bc, wd, bd, alpha, *,
                       compute_dtype=jnp.bfloat16,
                       tq_target=None, tk_target=None):
    """x_nchw: (B, C, H, W) float32. Weights in (C_in, C_out) matmul layout."""
    B, C, H, W = x_nchw.shape
    HW = H * W
    Cr = wb.shape[1]
    f32 = jnp.float32

    # Lane-dense zero-padding of the channel dims (does not change the math:
    # zero K-columns add nothing to fb@fc^T, padded fd channels are sliced off).
    Cp = _round_up(C, 128)
    Crp = _round_up(Cr, 128)

    # Generation-aware tile targets: v7x has half the VMEM of v5e/v6e.
    if tq_target is None or tk_target is None:
        try:
            kind = jax.devices()[0].device_kind.lower()
        except Exception:
            kind = ""
        dq, dk = (256, 512) if "v7" in kind else (512, 512)
        tq_target = tq_target or dq
        tk_target = tk_target or dk
    tq = _largest_tile(HW, tq_target)
    tk = _largest_tile(HW, tk_target)
    tp = _largest_tile(HW, 512)

    # NCHW -> (B, HW, Cp) pixel-major / channel-last (channels on the lane dim).
    x_pix = jnp.transpose(x_nchw.reshape(B, C, HW), (0, 2, 1)).astype(f32)
    x_pix = jnp.pad(x_pix, ((0, 0), (0, 0), (0, Cp - C)))

    def pad2(w, r, c):
        return jnp.pad(w, ((0, r - w.shape[0]), (0, c - w.shape[1])))

    wb_p = pad2(wb, Cp, Crp).astype(compute_dtype)
    wc_p = pad2(wc, Cp, Crp).astype(compute_dtype)
    wd_p = pad2(wd, Cp, Cp).astype(compute_dtype)
    bb_p = pad2(bb, 1, Crp).astype(f32)
    bc_p = pad2(bc, 1, Crp).astype(f32)
    bd_p = pad2(bd, 1, Cp).astype(f32)

    vmem_cap = 48 * 1024 * 1024  # above default scoped limit, < v7x physical

    # ---- call 1: projections fb/fc/fd, computed once per pixel --------------
    fb, fc, fd = pl.pallas_call(
        _pam_proj_kernel,
        out_shape=(jax.ShapeDtypeStruct((B, HW, Crp), compute_dtype),
                   jax.ShapeDtypeStruct((B, HW, Crp), compute_dtype),
                   jax.ShapeDtypeStruct((B, HW, Cp), compute_dtype)),
        grid_spec=pltpu.PrefetchScalarGridSpec(
            num_scalar_prefetch=0,
            grid=(B, HW // tp),
            in_specs=[
                pl.BlockSpec((None, tp, Cp), lambda b, i: (b, i, 0)),   # x slab
                # Constant-index weights/biases: DMA'd once (block index never
                # changes between consecutive grid steps).
                pl.BlockSpec((Cp, Crp), lambda b, i: (0, 0)),           # W_b
                pl.BlockSpec((1, Crp), lambda b, i: (0, 0)),            # b_b
                pl.BlockSpec((Cp, Crp), lambda b, i: (0, 0)),           # W_c
                pl.BlockSpec((1, Crp), lambda b, i: (0, 0)),            # b_c
                pl.BlockSpec((Cp, Cp), lambda b, i: (0, 0)),            # W_d
                pl.BlockSpec((1, Cp), lambda b, i: (0, 0)),             # b_d
            ],
            out_specs=(
                pl.BlockSpec((None, tp, Crp), lambda b, i: (b, i, 0)),
                pl.BlockSpec((None, tp, Crp), lambda b, i: (b, i, 0)),
                pl.BlockSpec((None, tp, Cp), lambda b, i: (b, i, 0)),
            )),
        compiler_params=pltpu.CompilerParams(
            dimension_semantics=("parallel", "parallel"),
            vmem_limit_bytes=vmem_cap),
    )(x_pix, wb_p, bb_p, wc_p, bc_p, wd_p, bd_p)

    # ---- call 2: flash-style attention + alpha * feat_e + x ------------------
    out_pix = pl.pallas_call(
        _pam_attn_kernel,
        out_shape=jax.ShapeDtypeStruct((B, HW, Cp), f32),
        grid_spec=pltpu.PrefetchScalarGridSpec(
            num_scalar_prefetch=0,
            grid=(B, HW // tq, HW // tk),
            in_specs=[
                pl.BlockSpec((None, tq, Crp), lambda b, qi, ki: (b, qi, 0)),  # fb
                pl.BlockSpec((None, tk, Crp), lambda b, qi, ki: (b, ki, 0)),  # fc
                pl.BlockSpec((None, tk, Cp), lambda b, qi, ki: (b, ki, 0)),   # fd
                pl.BlockSpec((None, tq, Cp), lambda b, qi, ki: (b, qi, 0)),   # x (residual)
                pl.BlockSpec(memory_space=pltpu.MemorySpace.SMEM),            # alpha scalar
            ],
            out_specs=pl.BlockSpec((None, tq, Cp), lambda b, qi, ki: (b, qi, 0)),
            scratch_shapes=[
                pltpu.VMEM((tq, 1), jnp.float32),    # m (running max)
                pltpu.VMEM((tq, 1), jnp.float32),    # l (running denom)
                pltpu.VMEM((tq, Cp), jnp.float32),   # acc (unnormalized output)
            ]),
        compiler_params=pltpu.CompilerParams(
            dimension_semantics=("parallel", "parallel", "arbitrary"),
            vmem_limit_bytes=vmem_cap),
    )(fb, fc, fd, x_pix, alpha)

    # strip channel padding, (B, HW, C) -> NCHW
    out_pix = out_pix[:, :, :C]
    return jnp.transpose(out_pix, (0, 2, 1)).reshape(B, C, H, W)


# ----------------------------- pure-JAX reference -----------------------------

def _reference(x_nchw, wb, bb, wc, bc, wd, bd, alpha):
    """Pure-JAX reference mirroring the PyTorch forward."""
    B, C, H, W = x_nchw.shape
    HW = H * W
    xp = jnp.transpose(x_nchw.reshape(B, C, HW), (0, 2, 1))          # (B, HW, C)
    fb = xp @ wb + bb                                                 # (B, HW, Cr)
    fc = xp @ wc + bc                                                 # (B, HW, Cr)
    fd = xp @ wd + bd                                                 # (B, HW, C)
    energy = jnp.einsum("bik,bjk->bij", fb, fc)                       # (B, HW, HW)
    attn = jax.nn.softmax(energy, axis=-1)
    feat_e = jnp.einsum("bij,bjc->bic", attn, fd)                     # (B, HW, C)
    out = alpha[0, 0] * feat_e + xp
    return jnp.transpose(out, (0, 2, 1)).reshape(B, C, H, W)


if __name__ == "__main__":
    # Small shapes consistent with the module: in_channels >= 8 (C//8 >= 1).
    B, C, H, W = 2, 64, 8, 8
    Cr = C // 8

    key = jax.random.PRNGKey(0)
    kx, kwb, kbb, kwc, kbc, kwd, kbd = jax.random.split(key, 7)

    x = jax.random.normal(kx, (B, C, H, W), dtype=jnp.float32)

    # Conv2d(1x1) weights stored in (C_in, C_out) matmul layout.
    wb = 0.1 * jax.random.normal(kwb, (C, Cr), dtype=jnp.float32)
    bb = 0.1 * jax.random.normal(kbb, (1, Cr), dtype=jnp.float32)
    wc = 0.1 * jax.random.normal(kwc, (C, Cr), dtype=jnp.float32)
    bc = 0.1 * jax.random.normal(kbc, (1, Cr), dtype=jnp.float32)
    wd = 0.1 * jax.random.normal(kwd, (C, C), dtype=jnp.float32)
    bd = 0.1 * jax.random.normal(kbd, (1, C), dtype=jnp.float32)
    # PyTorch initializes alpha to 0 (out == x); use a nonzero value so the
    # attention path is actually exercised.
    alpha = jnp.array([[0.5]], dtype=jnp.float32)

    ref = _reference(x, wb, bb, wc, bc, wd, bd, alpha)

    # f32 compute path: tight numerical check of the kernel structure.
    out_f32 = position_attention(x, wb, bb, wc, bc, wd, bd, alpha,
                                 compute_dtype=jnp.float32)
    out_f32 = jax.block_until_ready(out_f32)
    np.testing.assert_allclose(np.asarray(out_f32), np.asarray(ref),
                               rtol=2e-3, atol=2e-3)

    # bf16 MXU path with f32 accumulation (production config): loose check.
    out_bf16 = position_attention(x, wb, bb, wc, bc, wd, bd, alpha,
                                  compute_dtype=jnp.bfloat16)
    out_bf16 = jax.block_until_ready(out_bf16)
    np.testing.assert_allclose(np.asarray(out_bf16), np.asarray(ref),
                               rtol=6e-2, atol=6e-2)

    print("KERNEL_OK")
</pallas_src>

<mosaic_0001>
module attributes {stable_mosaic.version = 11 : i64} {
  func.func @_pam_proj_kernel(%arg0: i32, %arg1: i32, %arg2: memref<1x64x128xf32, #tpu.memory_space<vmem>>, %arg3: memref<128x128xf32, #tpu.memory_space<vmem>>, %arg4: memref<1x128xf32, #tpu.memory_space<vmem>>, %arg5: memref<128x128xf32, #tpu.memory_space<vmem>>, %arg6: memref<1x128xf32, #tpu.memory_space<vmem>>, %arg7: memref<128x128xf32, #tpu.memory_space<vmem>>, %arg8: memref<1x128xf32, #tpu.memory_space<vmem>>, %arg9: memref<1x64x128xf32, #tpu.memory_space<vmem>>, %arg10: memref<1x64x128xf32, #tpu.memory_space<vmem>>, %arg11: memref<1x64x128xf32, #tpu.memory_space<vmem>>) attributes {dimension_semantics = [#tpu.dimension_semantics<parallel>, #tpu.dimension_semantics<parallel>], iteration_bounds = array<i64: 2, 1>, scalar_prefetch = 0 : i64, scratch_operands = 0 : i64, tpu.core_type = #tpu.core_type<tc>, window_params = [{transform_indices = @transform_0, window_bounds = array<i64: 1, 64, 128>}, {pipeline_mode = #tpu.pipeline_mode<synchronous>, transform_indices = @transform_1, window_bounds = array<i64: 128, 128>}, {pipeline_mode = #tpu.pipeline_mode<synchronous>, transform_indices = @transform_2, window_bounds = array<i64: 1, 128>}, {pipeline_mode = #tpu.pipeline_mode<synchronous>, transform_indices = @transform_3, window_bounds = array<i64: 128, 128>}, {pipeline_mode = #tpu.pipeline_mode<synchronous>, transform_indices = @transform_4, window_bounds = array<i64: 1, 128>}, {pipeline_mode = #tpu.pipeline_mode<synchronous>, transform_indices = @transform_5, window_bounds = array<i64: 128, 128>}, {pipeline_mode = #tpu.pipeline_mode<synchronous>, transform_indices = @transform_6, window_bounds = array<i64: 1, 128>}, {transform_indices = @transform_7, window_bounds = array<i64: 1, 64, 128>}, {transform_indices = @transform_8, window_bounds = array<i64: 1, 64, 128>}, {transform_indices = @transform_9, window_bounds = array<i64: 1, 64, 128>}]} {
    %c0 = arith.constant 0 : index
    %c0_0 = arith.constant 0 : index
    %c0_1 = arith.constant 0 : index
    %0 = vector.load %arg2[%c0, %c0_0, %c0_1] : memref<1x64x128xf32, #tpu.memory_space<vmem>>, vector<1x64x128xf32>
    %1 = vector.shape_cast %0 : vector<1x64x128xf32> to vector<64x128xf32>
    %c0_2 = arith.constant 0 : index
    %c0_3 = arith.constant 0 : index
    %2 = vector.load %arg3[%c0_2, %c0_3] : memref<128x128xf32, #tpu.memory_space<vmem>>, vector<128x128xf32>
    %cst = arith.constant dense<0.000000e+00> : vector<64x128xf32>
    %3 = tpu.matmul %1, %2, %cst {dimension_numbers = #tpu.dot_dimension_numbers<[1], [0], [0], [1], [0, 0, 1, 1], [], []>} : vector<64x128xf32>, vector<128x128xf32>, vector<64x128xf32> -> vector<64x128xf32>
    %c0_4 = arith.constant 0 : index
    %c0_5 = arith.constant 0 : index
    %4 = vector.load %arg4[%c0_4, %c0_5] : memref<1x128xf32, #tpu.memory_space<vmem>>, vector<1x128xf32>
    %5 = vector.broadcast %4 : vector<1x128xf32> to vector<64x128xf32>
    %6 = arith.addf %3, %5 : vector<64x128xf32>
    %c0_6 = arith.constant 0 : index
    %c0_7 = arith.constant 0 : index
    %7 = vector.load %arg5[%c0_6, %c0_7] : memref<128x128xf32, #tpu.memory_space<vmem>>, vector<128x128xf32>
    %cst_8 = arith.constant dense<0.000000e+00> : vector<64x128xf32>
    %8 = tpu.matmul %1, %7, %cst_8 {dimension_numbers = #tpu.dot_dimension_numbers<[1], [0], [0], [1], [0, 0, 1, 1], [], []>} : vector<64x128xf32>, vector<128x128xf32>, vector<64x128xf32> -> vector<64x128xf32>
    %c0_9 = arith.constant 0 : index
    %c0_10 = arith.constant 0 : index
    %9 = vector.load %arg6[%c0_9, %c0_10] : memref<1x128xf32, #tpu.memory_space<vmem>>, vector<1x128xf32>
    %10 = vector.broadcast %9 : vector<1x128xf32> to vector<64x128xf32>
    %11 = arith.addf %8, %10 : vector<64x128xf32>
    %c0_11 = arith.constant 0 : index
    %c0_12 = arith.constant 0 : index
    %12 = vector.load %arg7[%c0_11, %c0_12] : memref<128x128xf32, #tpu.memory_space<vmem>>, vector<128x128xf32>
    %cst_13 = arith.constant dense<0.000000e+00> : vector<64x128xf32>
    %13 = tpu.matmul %1, %12, %cst_13 {dimension_numbers = #tpu.dot_dimension_numbers<[1], [0], [0], [1], [0, 0, 1, 1], [], []>} : vector<64x128xf32>, vector<128x128xf32>, vector<64x128xf32> -> vector<64x128xf32>
    %c0_14 = arith.constant 0 : index
    %c0_15 = arith.constant 0 : index
    %14 = vector.load %arg8[%c0_14, %c0_15] : memref<1x128xf32, #tpu.memory_space<vmem>>, vector<1x128xf32>
    %15 = vector.broadcast %14 : vector<1x128xf32> to vector<64x128xf32>
    %16 = arith.addf %13, %15 : vector<64x128xf32>
    %c0_16 = arith.constant 0 : index
    %c0_17 = arith.constant 0 : index
    %c0_18 = arith.constant 0 : index
    %17 = vector.load %arg9[%c0_16, %c0_17, %c0_18] : memref<1x64x128xf32, #tpu.memory_space<vmem>>, vector<1x64x128xf32>
    %18 = vector.shape_cast %17 : vector<1x64x128xf32> to vector<64x128xf32>
    %19 = vector.shape_cast %6 : vector<64x128xf32> to vector<1x64x128xf32>
    tpu.vector_store %arg9[%c0_16, %c0_17, %c0_18], %19 {strides = array<i32>} : memref<1x64x128xf32, #tpu.memory_space<vmem>>, vector<1x64x128xf32>,
    %c0_19 = arith.constant 0 : index
    %c0_20 = arith.constant 0 : index
    %c0_21 = arith.constant 0 : index
    %20 = vector.load %arg10[%c0_19, %c0_20, %c0_21] : memref<1x64x128xf32, #tpu.memory_space<vmem>>, vector<1x64x128xf32>
    %21 = vector.shape_cast %20 : vector<1x64x128xf32> to vector<64x128xf32>
    %22 = vector.shape_cast %11 : vector<64x128xf32> to vector<1x64x128xf32>
    tpu.vector_store %arg10[%c0_19, %c0_20, %c0_21], %22 {strides = array<i32>} : memref<1x64x128xf32, #tpu.memory_space<vmem>>, vector<1x64x128xf32>,
    %c0_22 = arith.constant 0 : index
    %c0_23 = arith.constant 0 : index
    %c0_24 = arith.constant 0 : index
    %23 = vector.load %arg11[%c0_22, %c0_23, %c0_24] : memref<1x64x128xf32, #tpu.memory_space<vmem>>, vector<1x64x128xf32>
    %24 = vector.shape_cast %23 : vector<1x64x128xf32> to vector<64x128xf32>
    %25 = vector.shape_cast %16 : vector<64x128xf32> to vector<1x64x128xf32>
    tpu.vector_store %arg11[%c0_22, %c0_23, %c0_24], %25 {strides = array<i32>} : memref<1x64x128xf32, #tpu.memory_space<vmem>>, vector<1x64x128xf32>,
    return
  }
  func.func @transform_0(%arg0: i32, %arg1: i32) -> (i32, i32, i32) {
    %c0_i32 = arith.constant 0 : i32
    %c0_i32_0 = arith.constant 0 : i32
    return %arg0, %arg1, %c0_i32 : i32, i32, i32
  }
  func.func @transform_1(%arg0: i32, %arg1: i32) -> (i32, i32) {
    %c0_i32 = arith.constant 0 : i32
    %c0_i32_0 = arith.constant 0 : i32
    %c0_i32_1 = arith.constant 0 : i32
    return %c0_i32, %c0_i32_0 : i32, i32
  }
  func.func @transform_2(%arg0: i32, %arg1: i32) -> (i32, i32) {
    %c0_i32 = arith.constant 0 : i32
    %c0_i32_0 = arith.constant 0 : i32
    %c0_i32_1 = arith.constant 0 : i32
    return %c0_i32, %c0_i32_0 : i32, i32
  }
  func.func @transform_3(%arg0: i32, %arg1: i32) -> (i32, i32) {
    %c0_i32 = arith.constant 0 : i32
    %c0_i32_0 = arith.constant 0 : i32
    %c0_i32_1 = arith.constant 0 : i32
    return %c0_i32, %c0_i32_0 : i32, i32
  }
  func.func @transform_4(%arg0: i32, %arg1: i32) -> (i32, i32) {
    %c0_i32 = arith.constant 0 : i32
    %c0_i32_0 = arith.constant 0 : i32
    %c0_i32_1 = arith.constant 0 : i32
    return %c0_i32, %c0_i32_0 : i32, i32
  }
  func.func @transform_5(%arg0: i32, %arg1: i32) -> (i32, i32) {
    %c0_i32 = arith.constant 0 : i32
    %c0_i32_0 = arith.constant 0 : i32
    %c0_i32_1 = arith.constant 0 : i32
    return %c0_i32, %c0_i32_0 : i32, i32
  }
  func.func @transform_6(%arg0: i32, %arg1: i32) -> (i32, i32) {
    %c0_i32 = arith.constant 0 : i32
    %c0_i32_0 = arith.constant 0 : i32
    %c0_i32_1 = arith.constant 0 : i32
    return %c0_i32, %c0_i32_0 : i32, i32
  }
  func.func @transform_7(%arg0: i32, %arg1: i32) -> (i32, i32, i32) {
    %c0_i32 = arith.constant 0 : i32
    %c0_i32_0 = arith.constant 0 : i32
    return %arg0, %arg1, %c0_i32 : i32, i32, i32
  }
  func.func @transform_8(%arg0: i32, %arg1: i32) -> (i32, i32, i32) {
    %c0_i32 = arith.constant 0 : i32
    %c0_i32_0 = arith.constant 0 : i32
    return %arg0, %arg1, %c0_i32 : i32, i32, i32
  }
  func.func @transform_9(%arg0: i32, %arg1: i32) -> (i32, i32, i32) {
    %c0_i32 = arith.constant 0 : i32
    %c0_i32_0 = arith.constant 0 : i32
    return %arg0, %arg1, %c0_i32 : i32, i32, i32
  }
}

</mosaic_0001>

<bundles_post_ra>
// kernel: tpu_custom_call.1
= control target key start
LH: loop header
LB: loop body
LE: loop exit
PB: predicated region body
PF: predicated region fallthrough
CT: control target
= control target key end

     0   :  { %s1795_s0 = inlined_call_operand.hbm [shape: f32[2,64,128], index: 0, kind: input, shape index: {}]   ;;  %s1796_s1 = inlined_call_operand.hbm [shape: f32[128,128], index: 1, kind: input, shape index: {}]   ;;  %s1797_s2 = inlined_call_operand.vmem [shape: f32[1,128], index: 2, kind: input, shape index: {}]   ;;  %s1798_s3 = inlined_call_operand.hbm [shape: f32[128,128], index: 3, kind: input, shape index: {}]   ;;  %s1799_s4 = inlined_call_operand.vmem [shape: f32[1,128], index: 4, kind: input, shape index: {}]   ;;  %s1800_s5 = inlined_call_operand.hbm [shape: f32[128,128], index: 5, kind: input, shape index: {}]   ;;  %s1801_s6 = inlined_call_operand.vmem [shape: f32[1,128], index: 6, kind: input, shape index: {}]   ;;  %s1802_s7 = inlined_call_operand.hbm [shape: f32[2,64,128], index: 7, kind: output, shape index: {0}]   ;;  %s1803_s8 = inlined_call_operand.hbm [shape: f32[2,64,128], index: 8, kind: output, shape index: {1}]   ;;  %s1804_s9 = inlined_call_operand.hbm [shape: f32[2,64,128], index: 9, kind: output, shape index: {2}]  }
   0x1   :  { %1813 = sst [smem:[#allocation23_spill]] %s1796_s1 }
   0x2   :  { %1814 = sst [smem:[#allocation24_spill]] %s1798_s3 }
   0x3   :  { %1815 = sst [smem:[#allocation25_spill]] %s1800_s5 }
   0x4   :  { %15 = vsyncpa [#allocation3], 0 }
   0x5   :  { %17 = vsyncpa [#allocation3 + $0x1], 0 }
   0x6   :  { %18 = vsyncpa [#allocation6], 0 }
   0x7   :  { %19 = vsyncpa [#allocation9], 0 }
   0x8   :  { %20 = vsyncpa [#allocation4], 0 }
   0x9   :  { %22 = vsyncpa [#allocation4 + $0x1], 0 }
   0xa   :  { %23 = vsyncpa [#allocation12], 0 }
   0xb   :  { %25 = vsyncpa [#allocation12 + $0x1], 0  ;;  %s1417_s30 = smov 0   ;;  %s1419_s10 = smov 0  }
   0xc   :  { %s1421_s11 = smov 0   ;;  %s1423_s12 = smov 0  }
   0xd   :  { %s1425_s13 = smov 0   ;;  %s1427_s14 = smov 0  }
   0xe LB: > { %1816 = sst [smem:[#allocation19_spill]] %s1338_s30  ;;  %s1448_s15 = sadd.s32 4294967295, %s1358_s14   ;;  %s1358_s14 = sphi %s1427_s14, %s31_s14   ;;  %s1354_s13 = sphi %s1425_s13, %s1840_s13   ;;  %s1350_s12 = sphi %s1423_s12, %s1839_s12   ;;  %s1346_s11 = sphi %s1421_s11, %s1838_s11   ;;  %s1342_s10 = sphi %s1419_s10, %s1837_s10   ;;  %s1338_s30 = sphi %s1417_s30, %s1836_s30  }
   0xf   : > { %1817 = sst [smem:[#allocation20_spill]] %s1358_s14  ;;  %s1805_s16 = sadd.s32 4294967294, %s1358_s14  }
  0x10   : > { %p65_p0 = scmp.ne.s32.totalorder %s1342_s10, %s1338_s30  ;;  %p66_p1 = scmp.eq.s32.totalorder %s1448_s15, 0 }
  0x11   : > { %p217_p2 = scmp.eq.s32.totalorder %s1448_s15, 1  ;;  %p223_p3 = scmp.eq.s32.totalorder %s1805_s16, 1 }
  0x12   : > { %p1459_p4 = por %p66_p1, %p65_p0  ;;  %p915_p5 = scmp.ge.s32.totalorder %s1358_s14, 1 }
  0x13   : > { %p1464_p6 = por %p223_p3, %p65_p0  ;;  %p286_p7 = scmp.lt.s32.totalorder %s1358_s14, 3 }
  0x14   : > { %s1821_s1 = sld [smem:[#allocation23_spill]]  ;;  %s1360_s23 = smov [#allocation5]  }
  0x15   : > { %s1819_s18 = scalar_select %p1464_p6, 1, 0 }
  0x16   : > { %p1472_p8 = pnand %p915_p5, %p286_p7  ;;  %s299_s24 = sshll.u32 %s1360_s23, 4  ;;  %s300_s24 = int_to_ptr.vmem [resolvable:$true] %s299_s24 }
  0x17   : > { %1820 = sst [smem:[#allocation21_spill]] %s1819_s18  ;;  %p919_p11 = scmp.ge.s32.totalorder %s1358_s14, 2 }
  0x18   : > { %p998_p9 = pneg %p1472_p8  ;;  %s1824_s3 = sld [smem:[#allocation24_spill]] }
  0x19   : > { %s1806_s29 = smov 128   ;;  %s1807_s19 = smov 8  }
  0x1a   : > { %s297_s21 = sshll.u32 %s1821_s1, 4  ;;  %p1480_p10 = pnand %p998_p9, %p66_p1  ;;  %s298_s21 = int_to_ptr.hbm [resolvable:$true] %s297_s21 }
  0x1b   : > { %s1363_s20 = smov [#allocation7]   ;;  %s1825_s5 = sld [smem:[#allocation25_spill]] }
  0x1c   : > { %1001 = dma.hbm_to_vmem [thread:$0]  (!%p1480_p10), %s298_s21, 2048, %s300_s24, [#allocation6], %s1806_s29, %s1806_s29, %s1807_s19  }
  0x1d   : > { %s316_s23 = sshll.u32 %s1363_s20, 4  ;;  %s1364_s27 = smov [#allocation8]   ;;  %s317_s23 = int_to_ptr.vmem [resolvable:$true] %s316_s23 }
  0x1e   : > { %s314_s28 = sshll.u32 %s1824_s3, 4  ;;  %s333_s3 = sshll.u32 %s1364_s27, 4  ;;  %s315_s28 = int_to_ptr.hbm [resolvable:$true] %s314_s28  ;;  %s334_s3 = int_to_ptr.vmem [resolvable:$true] %s333_s3 }
  0x1f   : > { %1004 = dma.hbm_to_vmem [thread:$0]  (!%p1480_p10), %s315_s28, 2048, %s317_s23, [#allocation6], %s1806_s29, %s1806_s29, %s1807_s19  }
  0x20   : > { %s43_s1 = sadd.s32 1, %s1354_s13  ;;  %s52_s16 = sadd.s32 1, %s1346_s11 }
  0x21   : > { %s331_s26 = sshll.u32 %s1825_s5, 4  ;;  %p45_p12 = scmp.ge.s32.totalorder %s43_s1, 2  ;;  %s332_s26 = int_to_ptr.hbm [resolvable:$true] %s331_s26 }
  0x22   : > { %1007 = dma.hbm_to_vmem [thread:$0]  (!%p1480_p10), %s332_s26, 2048, %s334_s3, [#allocation9], %s1806_s29, %s1806_s29, %s1807_s19  }
  0x23   : > { %p59_p13 = scmp.ne.s32.totalorder %s1346_s11, %s1342_s10  ;;  %p60_p0 = scmp.eq.s32.totalorder %s1358_s14, 0 }
  0x24   : > { %s1842_s1 = smov (%p45_p12, %s43_s1), 0  ;;  %p1025_p7 = scmp.lt.s32.totalorder %s1358_s14, 2 }
  0x25   : > { %1826 = sst [smem:[#allocation22_spill]] %s1842_s1  ;;  %p1513_p3 = por %p60_p0, %p59_p13 }
  0x26   : > { %p1519_p5 = por %p217_p2, %p59_p13  ;;  %s47_s25 = ssub.s32 %s1354_s13, %s1842_s1 }
  0x27   : > { %p50_p9 = scmp.eq.s32.totalorder %s47_s25, 0  ;;  %s350_s3 = sand.u32 1, %s1346_s11  }
  0x28   : > { %s920_s28 = sshll.u32 %s350_s3, 6  ;;  %s942_s23 = sshll.u32 %s1354_s13, 6 }
  0x29   : > { %s1528_s20 = scalar_select %p50_p9, %s1346_s11, %s52_s16  }
  0x2a   : > { %s361_s29 = scalar_lea.hbm %s1795_s0, %s942_s23  ;;  %s354_s19 = scalar_lea.vmem [#allocation2], %s920_s28 }
  0x2b   : > { %s364_s5 = sshll.u32 %s354_s19, 4  ;;  %s362_s18 = sshll.u32 %s361_s29, 4  ;;  %s365_s5 = int_to_ptr.vmem [resolvable:$true] %s364_s5  ;;  %s363_s18 = int_to_ptr.hbm [resolvable:$true] %s362_s18 }
  0x2c   : > { %p1009_p2 = pnand %p1025_p7, %p1513_p3  ;;  %s351_s30 = scalar_lea.sflag [#allocation3], %s350_s3 }
  0x2d   : > { %s1829_s1 = smov 8   ;;  %s1830_s14 = smov 128  }
  0x2e   : > { %1011 = dma.hbm_to_vmem [thread:$0]  (!%p1009_p2), %s363_s18, 1024, %s365_s5, %s351_s30, %s1830_s14, %s1830_s14, %s1829_s1  }
  0x2f   : > { %376 = sbr.rel (%p1472_p8) target bundleno = 293 (0x125), region = 48  ;;  %s1542_s16 = sand.u32 (!%p1472_p8), 1, %s1342_s10  }
  0x30   : > { %s1545_s19 = sshll.u32 (!%p1472_p8), %s1542_s16, 6  ;;  %s379_s29 = scalar_lea.sflag (!%p1472_p8), [#allocation3], %s1542_s16 }
  0x31   : > { %s1549_s21 = scalar_lea.vmem (!%p1472_p8), [#allocation2], %s1545_s19 }
  0x34   : > { %1317 = dma.done.wait (%p1459_p4), %s379_s29, 1024  }
  0x35   : > { %1319 = vsyncadd (%p1459_p4), %s379_s29, 4294966272 }
  0x36   : > { %1321 = dma.done.wait (%p66_p1), [#allocation6], 4096  }
  0x37   : > { %1323 = vsyncadd (%p66_p1), [#allocation6], 4294963200 }
  0x38   : > { %1325 = dma.done.wait (%p66_p1), [#allocation9], 2048  }
  0x39   : > { %1327 = vsyncadd (%p66_p1), [#allocation9], 4294965248  ;;  %v592_v0 = vld [vmem:[#allocation8 + $0x78] sm:$0xff]  ;;  %v591_v1 = vld [vmem:[#allocation8 + $0x70] sm:$0xff]  ;;  %s1640_s1 = scalar_lea.vmem [#allocation11], %s1545_s19  ;;  %s1646_s25 = scalar_lea.vmem [#allocation10], %s1545_s19 }
  0x3a   : > { %597 = vmatpush.msra.mxu2 %v592_v0  ;;  %v590_v2 = vld [vmem:[#allocation8 + $0x68] sm:$0xff]  ;;  %v1563_v3 = vld [vmem:[#allocation7 + $0x78] sm:$0xff]  ;;  %v1566_v4 = vld [vmem:[#allocation7 + $0x70] sm:$0xff]  ;;  %s1650_s3 = scalar_lea.vmem [#allocation13], %s1545_s19  ;;  %s1679_s28 = sshll.u32 %s1350_s12, 6 }
  0x3b   : > { %536 = vmatpush.msra.mxu1 %v1563_v3  ;;  %v589_v5 = vld [vmem:[#allocation8 + $0x60] sm:$0xff]  ;;  %v1568_v6 = vld [vmem:[#allocation7 + $0x68] sm:$0xff]  ;;  %v470_v7 = vld [vmem:[#allocation5 + $0x78] sm:$0xff]  ;;  %s686_s27 = scalar_lea.hbm %s1802_s7, %s1679_s28  ;;  %s687_s19 = sshll.u32 %s1646_s25, 4  ;;  %s1694_s19 = int_to_ptr.vmem [resolvable:$true] %s687_s19 }
  0x3c   : > { %598 = vmatpush.msra.mxu2 %v591_v1  ;;  %v588_v8 = vld [vmem:[#allocation8 + $0x58] sm:$0xff]  ;;  %v1571_v9 = vld [vmem:[#allocation7 + $0x60] sm:$0xff]  ;;  %475 = vmatpush.msra.mxu0 %v470_v7  ;;  %v469_v10 = vld [vmem:[#allocation5 + $0x70] sm:$0xff]  ;;  %s706_s12 = sshll.u32 %s1640_s1, 4  ;;  %s1692_s29 = sshll.u32 %s686_s27, 4  ;;  %s690_s29 = int_to_ptr.hbm [resolvable:$true] %s1692_s29  ;;  %s1709_s12 = int_to_ptr.vmem [resolvable:$true] %s706_s12 }
  0x3d   : > { %537 = vmatpush.msra.mxu1 %v1566_v4  ;;  %946 = vmatpush.msra.mxu3 %v470_v7  ;;  %v468_v11 = vld [vmem:[#allocation5 + $0x68] sm:$0xff]  ;;  %v587_v12 = vld [vmem:[#allocation8 + $0x50] sm:$0xff]  ;;  %v1574_v13 = vld [vmem:[#allocation7 + $0x58] sm:$0xff]  ;;  %s705_s30 = scalar_lea.hbm %s1803_s8, %s1679_s28  ;;  %s667_s14 = sand.u32 1, %s1448_s15  }
  0x3e   : > { %599 = vmatpush.msra.mxu2 %v590_v2  ;;  %476 = vmatpush.msra.mxu0 %v469_v10  ;;  %v467_v14 = vld [vmem:[#allocation5 + $0x60] sm:$0xff]  ;;  %v586_v15 = vld [vmem:[#allocation8 + $0x48] sm:$0xff]  ;;  %v1577_v16 = vld [vmem:[#allocation7 + $0x50] sm:$0xff]  ;;  %s1707_s17 = sshll.u32 %s705_s30, 4  ;;  %s663_s18 = scalar_lea.sflag [#allocation4], %s1542_s16  ;;  %s709_s17 = int_to_ptr.hbm [resolvable:$true] %s1707_s17 }
  0x3f   : > { %538 = vmatpush.msra.mxu1 %v1568_v6  ;;  %947 = vmatpush.msra.mxu3 %v469_v10  ;;  %v466_v17 = vld [vmem:[#allocation5 + $0x58] sm:$0xff]  ;;  %v585_v18 = vld [vmem:[#allocation8 + $0x40] sm:$0xff]  ;;  %v1580_v19 = vld [vmem:[#allocation7 + $0x48] sm:$0xff]  ;;  %s1222_s22 = sshra.s32 %s690_s29, 4  ;;  %s1223_s22 = int_to_ptr.hbm [resolvable:$true] %s1222_s22 }
  0x40   : > { %600 = vmatpush.msra.mxu2 %v589_v5  ;;  %477 = vmatpush.msra.mxu0 %v468_v11  ;;  %v465_v20 = vld [vmem:[#allocation5 + $0x50] sm:$0xff]  ;;  %v584_v21 = vld [vmem:[#allocation8 + $0x38] sm:$0xff]  ;;  %v1583_v22 = vld [vmem:[#allocation7 + $0x40] sm:$0xff]  ;;  %s1224_s23 = scalar_lea.hbm %s1223_s22, 64  ;;  %p1229_p10 = scmp.lt.s32.totalorder %s1223_s22, %s1802_s7 }
  0x41   : > { %539 = vmatpush.msra.mxu1 %v1571_v9  ;;  %948 = vmatpush.msra.mxu3 %v468_v11  ;;  %v464_v23 = vld [vmem:[#allocation5 + $0x48] sm:$0xff]  ;;  %v583_v24 = vld [vmem:[#allocation8 + $0x30] sm:$0xff]  ;;  %v1586_v25 = vld [vmem:[#allocation7 + $0x38] sm:$0xff]  ;;  %p1225_p1 = scmp.ne.s32.totalorder %s1223_s22, %s1224_s23 }
  0x42   : > { %601 = vmatpush.msra.mxu2 %v588_v8  ;;  %478 = vmatpush.msra.mxu0 %v467_v14  ;;  %v463_v26 = vld [vmem:[#allocation5 + $0x40] sm:$0xff]  ;;  %v582_v27 = vld [vmem:[#allocation8 + $0x28] sm:$0xff]  ;;  %v1589_v28 = vld [vmem:[#allocation7 + $0x30] sm:$0xff] }
  0x43   : > { %540 = vmatpush.msra.mxu1 %v1574_v13  ;;  %949 = vmatpush.msra.mxu3 %v467_v14  ;;  %v462_v29 = vld [vmem:[#allocation5 + $0x38] sm:$0xff]  ;;  %v581_v30 = vld [vmem:[#allocation8 + $0x20] sm:$0xff]  ;;  %v1592_v31 = vld [vmem:[#allocation7 + $0x28] sm:$0xff]  ;;  %p1226_p4 = pnand %p1225_p1, %p1519_p5 }
  0x44   : > { %602 = vmatpush.msra.mxu2 %v587_v12  ;;  %479 = vmatpush.msra.mxu0 %v466_v17  ;;  %v461_v32 = vld [vmem:[#allocation5 + $0x30] sm:$0xff]  ;;  %v580_v33 = vld [vmem:[#allocation8 + $0x18] sm:$0xff]  ;;  %v1595_v34 = vld [vmem:[#allocation7 + $0x20] sm:$0xff] }
  0x45   : > { %541 = vmatpush.msra.mxu1 %v1577_v16  ;;  %950 = vmatpush.msra.mxu3 %v466_v17  ;;  %v460_v35 = vld [vmem:[#allocation5 + $0x28] sm:$0xff]  ;;  %v579_v36 = vld [vmem:[#allocation8 + $0x10] sm:$0xff]  ;;  %v1598_v37 = vld [vmem:[#allocation7 + $0x18] sm:$0xff]  ;;  %p1227_p8 = pneg %p1226_p4 }
  0x46   : > { %603 = vmatpush.msra.mxu2 %v586_v15  ;;  %480 = vmatpush.msra.mxu0 %v465_v20  ;;  %v459_v38 = vld [vmem:[#allocation5 + $0x20] sm:$0xff]  ;;  %v578_v39 = vld [vmem:[#allocation8 + $0x8] sm:$0xff]  ;;  %v518_v40 = vld [vmem:[#allocation7 + $0x10] sm:$0xff] }
  0x47   : > { %542 = vmatpush.msra.mxu1 %v1580_v19  ;;  %951 = vmatpush.msra.mxu3 %v465_v20  ;;  %v458_v41 = vld [vmem:[#allocation5 + $0x18] sm:$0xff]  ;;  %v577_v42 = vld [vmem:[#allocation8] sm:$0xff]  ;;  %v517_v43 = vld [vmem:[#allocation7 + $0x8] sm:$0xff] }
  0x48   : > { %604 = vmatpush.msra.mxu2 %v585_v18  ;;  %481 = vmatpush.msra.mxu0 %v464_v23  ;;  %v447_v44 = vld [vmem:[%s1549_s21] sm:$0xff]  ;;  %v457_v45 = vld [vmem:[#allocation5 + $0x10] sm:$0xff]  ;;  %v456_v47 = vld [vmem:[#allocation5 + $0x8] sm:$0xff] }
  0x49   : > { %543 = vmatpush.msra.mxu1 %v1583_v22  ;;  %952 = vmatpush.msra.mxu3 %v464_v23  ;;  %v516_v46 = vld [vmem:[#allocation7] sm:$0xff]  ;;  %v453_v49 = vld [vmem:[%s1549_s21 + $0x30] sm:$0xff]  ;;  %v448_v50 = vld [vmem:[%s1549_s21 + $0x8] sm:$0xff] }
  0x4a   : > { %605 = vmatpush.msra.mxu2 %v584_v21  ;;  %482 = vmatpush.msra.mxu0 %v463_v26  ;;  %v455_v48 = vld [vmem:[#allocation5] sm:$0xff]  ;;  %v454_v51 = vld [vmem:[%s1549_s21 + $0x38] sm:$0xff]  ;;  %v449_v52 = vld [vmem:[%s1549_s21 + $0x10] sm:$0xff] }
  0x4b   : > { %544 = vmatpush.msra.mxu1 %v1586_v25  ;;  %953 = vmatpush.msra.mxu3 %v463_v26  ;;  %v450_v53 = vld [vmem:[%s1549_s21 + $0x18] sm:$0xff]  ;;  %v451_v54 = vld [vmem:[%s1549_s21 + $0x20] sm:$0xff]  ;;  %v452_v55 = vld [vmem:[%s1549_s21 + $0x28] sm:$0xff]  ;;  %s1228_s21 = scalar_lea.hbm %s1802_s7, 128 }
  0x4c   : > { %606 = vmatpush.msra.mxu2 %v583_v24  ;;  %483 = vmatpush.msra.mxu0 %v462_v29  ;;  %v1626_v56 = vld [vmem:[%s1799_s4] ss:$0 sm:$0xff]  ;;  %p1230_p12 = scmp.lt.s32.totalorder %s1228_s21, %s1224_s23 }
  0x4d   : > { %545 = vmatpush.msra.mxu1 %v1589_v28  ;;  %954 = vmatpush.msra.mxu3 %v462_v29  ;;  %v1631_v58 = vld [vmem:[%s1797_s2] ss:$0 sm:$0xff] }
  0x4e   : > { %607 = vmatpush.msra.mxu2 %v582_v27  ;;  %484 = vmatpush.msra.mxu0 %v461_v32  ;;  %v1636_v59 = vld [vmem:[%s1801_s6] ss:$0 sm:$0xff]  ;;  %p1231_p13 = por %p1230_p12, %p1229_p10 }
  0x4f   : > { %546 = vmatpush.msra.mxu1 %v1592_v31  ;;  %955 = vmatpush.msra.mxu3 %v461_v32 }
  0x50   : > { %608 = vmatpush.msra.mxu2 %v581_v30  ;;  %485 = vmatpush.msra.mxu0 %v460_v35  ;;  %p1232_p0 = pnand %p1231_p13, %p1227_p8 }
  0x51   : > { %547 = vmatpush.msra.mxu1 %v1595_v34  ;;  %956 = vmatpush.msra.mxu3 %v460_v35 }
  0x52   : > { %609 = vmatpush.msra.mxu2 %v580_v33  ;;  %486 = vmatpush.msra.mxu0 %v459_v38 }
  0x53   : > { %548 = vmatpush.msra.mxu1 %v1598_v37  ;;  %957 = vmatpush.msra.mxu3 %v459_v38 }
  0x54   : > { %610 = vmatpush.msra.mxu2 %v579_v36  ;;  %487 = vmatpush.msra.mxu0 %v458_v41 }
  0x55   : > { %549 = vmatpush.msra.mxu1 %v518_v40  ;;  %958 = vmatpush.msra.mxu3 %v458_v41 }
  0x56   : > { %611 = vmatpush.msra.mxu2 %v578_v39  ;;  %488 = vmatpush.msra.mxu0 %v457_v45 }
  0x57   : > { %550 = vmatpush.msra.mxu1 %v517_v43  ;;  %959 = vmatpush.msra.mxu3 %v457_v45 }
  0x58   : > { %612 = vmatpush.msra.mxu2 %v577_v42  ;;  %489 = vmatpush.msra.mxu0 %v456_v47 }
  0x59   : > { %613 = vmatmul.f32.vlgmr.msra.gmra.mxu2 %v447_v44  ;;  %551 = vmatpush.msra.mxu1 %v516_v46 }
  0x5a   : > { %552 = vmatmul.f32.vlgmr.msra.gmra.mxu1 %v447_v44  ;;  %960 = vmatpush.msra.mxu3 %v456_v47 }
  0x5b   : > { %490 = vmatpush.msra.mxu0 %v455_v48 }
  0x5c   : > { %491 = vmatmul.f32.vlgmr.msra.gmra.mxu0 %v447_v44  ;;  %961 = vmatpush.msra.mxu3 %v455_v48 }
  0x5d   : > { %509 = vmatmul.f32.vlgmr.msra.gmra.mxu3 %v453_v49 }
  0x5e   : > { %962 = vmatpush.msrb.mxu3 %v1563_v3 }
  0x60   : > { %963 = vmatpush.msrb.mxu3 %v1566_v4 }
  0x61   : > { %616 = vmatmul.f32.gmra.mxu2 %v448_v50 }
  0x62   : > { %555 = vmatmul.f32.gmra.mxu1 %v448_v50  ;;  %964 = vmatpush.msrb.mxu3 %v1568_v6 }
  0x64   : > { %965 = vmatpush.msrb.mxu3 %v1571_v9  ;;  %494 = vmatmul.f32.gmra.mxu0 %v448_v50 }
  0x65   : > { %512 = vmatmul.f32.gmra.mxu3 %v454_v51 }
  0x66   : > { %966 = vmatpush.msrb.mxu3 %v1574_v13 }
  0x68   : > { %967 = vmatpush.msrb.mxu3 %v1577_v16 }
  0x69   : > { %619 = vmatmul.f32.gmra.mxu2 %v449_v52 }
  0x6a   : > { %558 = vmatmul.f32.gmra.mxu1 %v449_v52  ;;  %968 = vmatpush.msrb.mxu3 %v1580_v19 }
  0x6c   : > { %969 = vmatpush.msrb.mxu3 %v1583_v22  ;;  %497 = vmatmul.f32.gmra.mxu0 %v449_v52 }
  0x6e   : > { %970 = vmatpush.msrb.mxu3 %v1586_v25 }
  0x70   : > { %971 = vmatpush.msrb.mxu3 %v1589_v28 }
  0x71   : > { %622 = vmatmul.f32.gmra.mxu2 %v450_v53 }
  0x72   : > { %561 = vmatmul.f32.gmra.mxu1 %v450_v53  ;;  %972 = vmatpush.msrb.mxu3 %v1592_v31 }
  0x74   : > { %973 = vmatpush.msrb.mxu3 %v1595_v34  ;;  %500 = vmatmul.f32.gmra.mxu0 %v450_v53 }
  0x76   : > { %974 = vmatpush.msrb.mxu3 %v1598_v37 }
  0x78   : > { %975 = vmatpush.msrb.mxu3 %v518_v40 }
  0x79   : > { %625 = vmatmul.f32.gmra.mxu2 %v451_v54 }
  0x7a   : > { %564 = vmatmul.f32.gmra.mxu1 %v451_v54  ;;  %976 = vmatpush.msrb.mxu3 %v517_v43 }
  0x7c   : > { %977 = vmatpush.msrb.mxu3 %v516_v46  ;;  %503 = vmatmul.f32.gmra.mxu0 %v451_v54 }
  0x7d   : > { %573 = vmatmul.f32.vlgmr.msrb.gmra.mxu3 %v454_v51 }
  0x81   : > { %628 = vmatmul.f32.gmra.mxu2 %v452_v55 }
  0x82   : > { %567 = vmatmul.f32.gmra.mxu1 %v452_v55 }
  0x84   : > { %506 = vmatmul.f32.gmra.mxu0 %v452_v55 }
  0x89   : > { %631 = vmatmul.f32.gmra.mxu2 %v453_v49 }
  0x8a   : > { %570 = vmatmul.f32.gmra.mxu1 %v453_v49 }
  0x91   : > { %634 = vmatmul.f32.gmra.mxu2 %v454_v51 }
  0xd7   : > { %v553_v57 = vpop.f32.mrf.mxu1 }
  0xd8   : > { %v554_v60 = vadd.f32 %v1626_v56, %v553_v57 }
  0xd9   : > { %v492_v61 = vpop.f32.mrf.mxu0 }
  0xda   : > { %646 = vst [vmem:[%s1640_s1] sm:$0xff] %v554_v60  ;;  %v493_v63 = vadd.f32 %v1631_v58, %v492_v61 }
  0xdc   : > { %v614_v62 = vpop.f32.mrf.mxu2  ;;  %638 = vst [vmem:[%s1646_s25] sm:$0xff] %v493_v63 }
  0xdd   : > { %v615_v0 = vadd.f32 %v1636_v59, %v614_v62 }
  0xdf   : > { %654 = vst [vmem:[%s1650_s3] sm:$0xff] %v615_v0  ;;  %v556_v1 = vpop.f32.mrf.mxu1 }
  0xe0   : > { %v557_v2 = vadd.f32 %v1626_v56, %v556_v1  ;;  %v510_v4 = vpop.f32.mrf.mxu3 }
  0xe1   : > { %v495_v3 = vpop.f32.mrf.mxu0  ;;  %v511_v7 = vadd.f32 %v1631_v58, %v510_v4 }
  0xe2   : > { %647 = vst [vmem:[%s1640_s1 + $0x8] sm:$0xff] %v557_v2  ;;  %v496_v6 = vadd.f32 %v1631_v58, %v495_v3 }
  0xe3   : > { %644 = vst [vmem:[%s1646_s25 + $0x30] sm:$0xff] %v511_v7 }
  0xe4   : > { %v617_v5 = vpop.f32.mrf.mxu2  ;;  %639 = vst [vmem:[%s1646_s25 + $0x8] sm:$0xff] %v496_v6 }
  0xe5   : > { %v618_v8 = vadd.f32 %v1636_v59, %v617_v5 }
  0xe7   : > { %655 = vst [vmem:[%s1650_s3 + $0x8] sm:$0xff] %v618_v8  ;;  %v559_v9 = vpop.f32.mrf.mxu1 }
  0xe8   : > { %v560_v10 = vadd.f32 %v1626_v56, %v559_v9  ;;  %v513_v12 = vpop.f32.mrf.mxu3 }
  0xe9   : > { %v498_v11 = vpop.f32.mrf.mxu0  ;;  %v514_v15 = vadd.f32 %v1631_v58, %v513_v12 }
  0xea   : > { %648 = vst [vmem:[%s1640_s1 + $0x10] sm:$0xff] %v560_v10  ;;  %v499_v14 = vadd.f32 %v1631_v58, %v498_v11 }
  0xeb   : > { %645 = vst [vmem:[%s1646_s25 + $0x38] sm:$0xff] %v514_v15 }
  0xec   : > { %v620_v13 = vpop.f32.mrf.mxu2  ;;  %640 = vst [vmem:[%s1646_s25 + $0x10] sm:$0xff] %v499_v14 }
  0xed   : > { %v621_v16 = vadd.f32 %v1636_v59, %v620_v13 }
  0xef   : > { %656 = vst [vmem:[%s1650_s3 + $0x10] sm:$0xff] %v621_v16  ;;  %v562_v17 = vpop.f32.mrf.mxu1 }
  0xf0   : > { %v563_v18 = vadd.f32 %v1626_v56, %v562_v17 }
  0xf1   : > { %v501_v19 = vpop.f32.mrf.mxu0 }
  0xf2   : > { %649 = vst [vmem:[%s1640_s1 + $0x18] sm:$0xff] %v563_v18  ;;  %v502_v21 = vadd.f32 %v1631_v58, %v501_v19 }
  0xf4   : > { %v623_v20 = vpop.f32.mrf.mxu2  ;;  %641 = vst [vmem:[%s1646_s25 + $0x18] sm:$0xff] %v502_v21 }
  0xf5   : > { %v624_v22 = vadd.f32 %v1636_v59, %v623_v20 }
  0xf7   : > { %657 = vst [vmem:[%s1650_s3 + $0x18] sm:$0xff] %v624_v22  ;;  %v565_v23 = vpop.f32.mrf.mxu1 }
  0xf8   : > { %v566_v24 = vadd.f32 %v1626_v56, %v565_v23 }
  0xf9   : > { %v504_v25 = vpop.f32.mrf.mxu0 }
  0xfa   : > { %650 = vst [vmem:[%s1640_s1 + $0x20] sm:$0xff] %v566_v24  ;;  %v505_v27 = vadd.f32 %v1631_v58, %v504_v25 }
  0xfc   : > { %v626_v26 = vpop.f32.mrf.mxu2  ;;  %642 = vst [vmem:[%s1646_s25 + $0x20] sm:$0xff] %v505_v27 }
  0xfd   : > { %v627_v28 = vadd.f32 %v1636_v59, %v626_v26 }
  0xff   : > { %658 = vst [vmem:[%s1650_s3 + $0x20] sm:$0xff] %v627_v28  ;;  %v568_v29 = vpop.f32.mrf.mxu1 }
 0x100   : > { %v569_v30 = vadd.f32 %v1626_v56, %v568_v29  ;;  %v574_v31 = vpop.f32.mrf.mxu3 }
 0x101   : > { %v575_v32 = vadd.f32 %v1626_v56, %v574_v31  ;;  %v507_v33 = vpop.f32.mrf.mxu0 }
 0x102   : > { %651 = vst [vmem:[%s1640_s1 + $0x28] sm:$0xff] %v569_v30  ;;  %v508_v35 = vadd.f32 %v1631_v58, %v507_v33 }
 0x103   : > { %653 = vst [vmem:[%s1640_s1 + $0x38] sm:$0xff] %v575_v32 }
 0x104   : > { %v629_v34 = vpop.f32.mrf.mxu2  ;;  %643 = vst [vmem:[%s1646_s25 + $0x28] sm:$0xff] %v508_v35 }
 0x105   : > { %v630_v36 = vadd.f32 %v1636_v59, %v629_v34 }
 0x107   : > { %659 = vst [vmem:[%s1650_s3 + $0x28] sm:$0xff] %v630_v36  ;;  %v571_v37 = vpop.f32.mrf.mxu1 }
 0x108   : > { %1235 = shalt.err (!%p1232_p0)
}
 0x109   : > { %s1365_s16 = smov 128   ;;  %s1366_s5 = smov 8   ;;  %v572_v38 = vadd.f32 %v1626_v56, %v571_v37 }
 0x10a   : > { %992 = dma.vmem_to_hbm [thread:$0]  (%p1519_p5), %s1694_s19, 1024, %s690_s29, %s663_s18, %s1365_s16, %s1365_s16, %s1366_s5  }
 0x10b   : > { %652 = vst [vmem:[%s1640_s1 + $0x30] sm:$0xff] %v572_v38  ;;  %s1730_s30 = scalar_lea.sflag [#allocation12], %s667_s14  ;;  %s1250_s22 = sshra.s32 %s709_s17, 4  ;;  %s1251_s22 = int_to_ptr.hbm [resolvable:$true] %s1250_s22 }
 0x10c   : > { %v632_v39 = vpop.f32.mrf.mxu2  ;;  %s1252_s23 = scalar_lea.hbm %s1251_s22, 64  ;;  %s1256_s21 = scalar_lea.hbm %s1803_s8, 128 }
 0x10d   : > { %p1253_p3 = scmp.ne.s32.totalorder %s1251_s22, %s1252_s23  ;;  %p1257_p2 = scmp.lt.s32.totalorder %s1251_s22, %s1803_s8 }
 0x10e   : > { %p1258_p1 = scmp.lt.s32.totalorder %s1256_s21, %s1252_s23 }
 0x10f   : > { %p1254_p7 = pnand %p1253_p3, %p1519_p5 }
 0x110   : > { %p1259_p4 = por %p1258_p1, %p1257_p2 }
 0x111   : > { %p1255_p9 = pneg %p1254_p7 }
 0x113   : > { %p1260_p8 = pnand %p1259_p4, %p1255_p9 }
 0x115   : > { %1263 = shalt.err (!%p1260_p8)
}
 0x116   : > { %993 = dma.vmem_to_hbm [thread:$0]  (%p1519_p5), %s1709_s12, 1024, %s709_s17, %s1730_s30, %s1365_s16, %s1365_s16, %s1366_s5   ;;  %v633_v40 = vadd.f32 %v1636_v59, %v632_v39  ;;  %v635_v41 = vpop.f32.mrf.mxu2 }
 0x117   : > { %s724_s14 = scalar_lea.hbm %s1804_s9, %s1679_s28  ;;  %s725_s18 = sshll.u32 %s1650_s3, 4  ;;  %v636_v42 = vadd.f32 %v1636_v59, %v635_v41  ;;  %s726_s18 = int_to_ptr.vmem [resolvable:$true] %s725_s18 }
 0x118   : > { %660 = vst [vmem:[%s1650_s3 + $0x30] sm:$0xff] %v633_v40  ;;  %s727_s15 = sshll.u32 %s724_s14, 4  ;;  %s1284_s26 = scalar_lea.hbm %s1804_s9, 128  ;;  %s728_s15 = int_to_ptr.hbm [resolvable:$true] %s727_s15 }
 0x119   : > { %661 = vst [vmem:[%s1650_s3 + $0x38] sm:$0xff] %v636_v42  ;;  %s1278_s22 = sshra.s32 %s728_s15, 4  ;;  %s1279_s22 = int_to_ptr.hbm [resolvable:$true] %s1278_s22 }
 0x11a   : > { %s1280_s23 = scalar_lea.hbm %s1279_s22, 64  ;;  %p1285_p0 = scmp.lt.s32.totalorder %s1279_s22, %s1804_s9 }
 0x11b   : > { %p1281_p10 = scmp.ne.s32.totalorder %s1279_s22, %s1280_s23  ;;  %p1286_p3 = scmp.lt.s32.totalorder %s1284_s26, %s1280_s23 }
 0x11d   : > { %p1282_p12 = pnand %p1281_p10, %p1519_p5  ;;  %p1287_p7 = por %p1286_p3, %p1285_p0 }
 0x11f   : > { %p1283_p13 = pneg %p1282_p12 }
 0x121   : > { %p1288_p9 = pnand %p1287_p7, %p1283_p13 }
 0x123   : > { %1291 = shalt.err (!%p1288_p9)
}
 0x124   : > { %994 = dma.vmem_to_hbm [thread:$0]  (%p1519_p5), %s726_s18, 1024, %s728_s15, %s1730_s30, %s1365_s16, %s1365_s16, %s1366_s5  }
 0x125 PF: > { %s1831_s3 = sld [smem:[#allocation19_spill]]  ;;  %p1013_p2 = pnand %p919_p11, %p1464_p6 }
 0x126   : > { %s1833_s25 = sld [smem:[#allocation20_spill]] }
 0x127   : > { %p1014_p1 = pneg %p1013_p2 }
 0x12b   : > { %s742_s19 = sand.u32 1, %s1831_s3  }
 0x12c   : > { %s743_s1 = scalar_lea.sflag [#allocation4], %s742_s19 }
 0x12d   : > { %1329 = dma.done.wait (%p1014_p1), %s743_s1, 1024  }
 0x12e   : > { %1331 = vsyncadd (%p1014_p1), %s743_s1, 4294966272  ;;  %s1834_s29 = sadd.s32 4294967294, %s1833_s25  }
 0x12f   : > { %s752_s24 = sand.u32 1, %s1834_s29  }
 0x130   : > { %s753_s14 = scalar_lea.sflag [#allocation12], %s752_s24 }
 0x131   : > { %1333 = dma.done.wait (%p1014_p1), %s753_s14, 2048  }
 0x132   : > { %1335 = vsyncadd (%p1014_p1), %s753_s14, 4294965248  ;;  %s31_s14 = sadd.s32 1, %s1833_s25   ;;  %s1835_s16 = sld [smem:[#allocation22_spill]] }
 0x133   : > { %p28_p5 = scmp.ge.s32.totalorder %s31_s14, 4   ;;  %s1836_s30 = smov %s1342_s10 }
 0x134   : > { %s1837_s10 = smov %s1346_s11  ;;  %s1838_s11 = smov %s1528_s20 }
 0x135   : > { %s1839_s12 = smov %s1354_s13  ;;  %30 = sbr.rel (!%p28_p5) target bundleno = 14 (0xe), region = 137 }
 0x138   : > { %s1840_s13 = smov %s1835_s16 }
 0x13a   :  { %769 = vsyncpa [#allocation3], 1 }
 0x13b   :  { %771 = vsyncpa [#allocation3 + $0x1], 1 }
 0x13c   :  { %772 = vsyncpa [#allocation6], 1 }
 0x13d   :  { %773 = vsyncpa [#allocation9], 1 }
 0x13e   :  { %774 = vsyncpa [#allocation4], 1 }
 0x13f   :  { %776 = vsyncpa [#allocation4 + $0x1], 1 }
 0x140   :  { %777 = vsyncpa [#allocation12], 1 }
 0x141   :  { %779 = vsyncpa [#allocation12 + $0x1], 1 }

</bundles_post_ra>
